<compile_context>
chip_gen: v5e
topology: v5e:2x2
jax: 0.10.0
libtpu: 0.0.40
codegen_flags: <defaults>
</compile_context>

<pallas_src>
import numpy as np
import jax
import jax.numpy as jnp
from jax.experimental import pallas as pl
from jax.experimental.pallas import tpu as pltpu


LOGITS_DTYPE = jnp.float32   # set to jnp.bfloat16 on v6e/v7x to halve HBM writeback
PREC = jax.lax.Precision.HIGHEST


# ------------------------------- Pallas kernel -------------------------------

def make_fused_heads_upsample_kernel(c_total, cin, classes, out_dtype):
    def kernel(wT_ref, b_ref, x_ref, uh_ref, uwT_ref, logits_ref, mask_ref):
        # wT_ref:   (c_total, cin)     SMEM   composed decoder+head 1x1-conv weights
        # b_ref:    (c_total,)         SMEM   composed biases
        # x_ref:    (1, cin, h, w)     VMEM   pooled features (full low-res plane)
        # uh_ref:   (hb, h)            VMEM   bilinear row-interp rows for this block
        # uwT_ref:  (w, Wp)            VMEM   bilinear col-interp, lane-padded to 128
        # logits_ref: (1, c_total, hb, Wp)    full-res logits, all heads concatenated
        # mask_ref:   (1, hb, Wp) int32       argmax over the first `classes` channels
        uh = uh_ref[...]                                             # (hb, h)
        uwT = uwT_ref[...]                                           # (w, Wp)

        # 1) Column-upsample each pooled *input* channel once (lane-dense N = Wp).
        z = [jnp.dot(x_ref[0, k], uwT, preferred_element_type=jnp.float32)
             for k in range(cin)]                                    # cin x (h, Wp)

        # 2) Per output channel: SMEM-scalar channel mix (the fused 1x1 convs),
        #    then lane-dense row upsample.  The bias is added before the row
        #    upsample; since every row of uh sums to 1 this equals adding it at
        #    low resolution (exact for the real, non-padded columns).
        #    Mask channels come first, so the argmax carry dies immediately
        #    after channel `classes - 1`.
        best_val = None
        best_idx = None
        for c in range(c_total):
            m = b_ref[c] + wT_ref[c, 0] * z[0]
            for k in range(1, cin):
                m = m + wT_ref[c, k] * z[k]                          # (h, Wp) VPU
            y = jnp.dot(uh, m, preferred_element_type=jnp.float32)   # (hb, Wp) MXU
            logits_ref[0, c] = y.astype(out_dtype)
            if c < classes:
                if c == 0:
                    best_val = y
                    best_idx = jnp.zeros(y.shape, jnp.int32)
                else:
                    upd = y > best_val       # strict '>' = torch.argmax tie rule
                    best_idx = jnp.where(upd, jnp.int32(c), best_idx)
                    best_val = jnp.maximum(y, best_val)
                if c == classes - 1:
                    mask_ref[0] = best_idx   # carry closed here (no spill later)
    return kernel


# ------------------------------ Pallas wrapper --------------------------------

def _round_up(n, m):
    return ((n + m - 1) // m) * m


def _vmem_limit_bytes():
    """Explicit scoped-VMEM limit: v5e's default is only 16 MiB and v7x has just
    64 MiB of physical VMEM per TensorCore, so derive it from the chip."""
    cap = 64 * 1024 * 1024                       # conservative fallback (v7x)
    try:
        info = pltpu.get_tpu_info()
        cap = int(getattr(info, "vmem_capacity_bytes", cap)) or cap
    except Exception:
        pass
    return min(int(0.75 * cap), 100 * 1024 * 1024)


def _pick_row_block(B, H, Wp, c_total, cin, h, w, budget_bytes, logits_itemsize):
    """Largest output-row block hb that (a) tiles H, (b) keeps the (8,128)
    constraint, (c) fits the double-buffered VMEM budget and (d) leaves at least
    2 total 'parallel' grid steps so both v7x TensorCores get work."""
    def vmem_bytes(hb):
        dbl = 2  # BlockSpec pipeline double-buffers every tiled operand
        out_logits = dbl * c_total * hb * Wp * logits_itemsize
        out_mask = dbl * hb * Wp * 4
        ins = dbl * (cin * h * w + hb * h + w * Wp) * 4
        live = (cin * h * Wp + h * Wp + 3 * hb * Wp) * 4   # z planes + mix + y/argmax
        return out_logits + out_mask + ins + live

    cands = [hb for hb in range(H, 0, -1)
             if H % hb == 0 and (hb % 8 == 0 or hb == H)]
    fitting = [hb for hb in cands if vmem_bytes(hb) <= budget_bytes]
    if not fitting:
        return cands[-1]
    for hb in fitting:                       # descending: largest first
        if B * (H // hb) >= 2:
            return hb
    return fitting[0]


def fused_heads_upsample_mask(pooled, wT_all, b_all, Uh, UwT, classes, W_out,
                              logits_dtype=jnp.float32):
    """Fused (all-heads 1x1 convs) + bilinear x4 upsample (align_corners=True)
    + class-compression argmax, in ONE pallas_call."""
    B, cin, h, w = pooled.shape
    c_total = int(wT_all.shape[0])
    H = int(Uh.shape[0])
    Wp = int(UwT.shape[1])

    vmem_limit = _vmem_limit_bytes()
    hb = _pick_row_block(B, H, Wp, c_total, cin, h, w,
                         budget_bytes=int(0.85 * vmem_limit),
                         logits_itemsize=np.dtype(logits_dtype).itemsize)
    # TODO(synk): for very large class counts add a channel-block grid axis for
    # the non-mask channels instead of keeping all c_total channels in one block.

    kernel = make_fused_heads_upsample_kernel(c_total, cin, classes, logits_dtype)
    logits, cat_mask = pl.pallas_call(
        kernel,
        out_shape=(jax.ShapeDtypeStruct((B, c_total, H, Wp), logits_dtype),
                   jax.ShapeDtypeStruct((B, H, Wp), jnp.int32)),
        grid=(B, H // hb),
        in_specs=[
            pl.BlockSpec(memory_space=pltpu.MemorySpace.SMEM),          # wT_all
            pl.BlockSpec(memory_space=pltpu.MemorySpace.SMEM),          # b_all
            pl.BlockSpec((1, cin, h, w), lambda b, j: (b, 0, 0, 0)),    # pooled
            pl.BlockSpec((hb, h), lambda b, j: (j, 0)),                 # Uh rows
            pl.BlockSpec((w, Wp), lambda b, j: (0, 0)),                 # UwT (padded)
        ],
        out_specs=(
            pl.BlockSpec((1, c_total, hb, Wp), lambda b, j: (b, 0, j, 0)),
            pl.BlockSpec((1, hb, Wp), lambda b, j: (b, j, 0)),
        ),
        compiler_params=pltpu.CompilerParams(
            dimension_semantics=("parallel", "parallel"),
            vmem_limit_bytes=vmem_limit),
    )(wT_all, b_all, pooled, Uh, UwT)

    if Wp != W_out:
        logits = logits[..., :W_out]
        cat_mask = cat_mask[..., :W_out]
    return logits, cat_mask


# ------------------------------ glue / params ---------------------------------

def head_out_channels(classes):
    # insertion order matters: mask channels MUST come first (kernel argmax)
    return {'mask': classes,
            'rotation': 4 * (classes - 1),
            'translation': 3 * (classes - 1),
            'scales': 3 * (classes - 1)}


def bilinear_matrix(out_size, in_size):
    """Interpolation matrix of nn.UpsamplingBilinear2d (align_corners=True)."""
    if in_size == 1:
        return jnp.ones((out_size, 1), jnp.float32)
    src = jnp.arange(out_size, dtype=jnp.float32) * (in_size - 1) / (out_size - 1)
    i0 = jnp.floor(src).astype(jnp.int32)
    i1 = jnp.minimum(i0 + 1, in_size - 1)
    frac = src - i0.astype(jnp.float32)
    oh0 = jax.nn.one_hot(i0, in_size, dtype=jnp.float32)
    oh1 = jax.nn.one_hot(i1, in_size, dtype=jnp.float32)
    return (1.0 - frac)[:, None] * oh0 + frac[:, None] * oh1


def init_params(key, in_channels, classes, dec_ch=128):
    """Deterministic synthetic weights (shapes follow PoseRegressor.__init__)."""
    p = {}
    heads = head_out_channels(classes)
    keys = jax.random.split(key, 4 * len(heads))
    for i, (name, cout) in enumerate(heads.items()):
        p[f'{name}_dec_w'] = 0.10 * jax.random.normal(
            keys[4 * i + 0], (in_channels, dec_ch), jnp.float32)
        p[f'{name}_dec_b'] = 0.05 * jax.random.normal(
            keys[4 * i + 1], (dec_ch,), jnp.float32)
        p[f'{name}_head_w'] = 0.05 * jax.random.normal(
            keys[4 * i + 2], (dec_ch, cout), jnp.float32)
        p[f'{name}_head_b'] = 0.05 * jax.random.normal(
            keys[4 * i + 3], (cout,), jnp.float32)
    return p


def compose_head_weights(params, classes):
    """Fold each branch's (decoder 1x1 conv -> head 1x1 conv) into one matmul and
    concatenate all heads along the output-channel axis (exact: no nonlinearity
    between the two 1x1 convs in the stand-in)."""
    Ws, bs = [], []
    for name in head_out_channels(classes):
        W = jnp.dot(params[f'{name}_dec_w'], params[f'{name}_head_w'],
                    precision=PREC)                                   # (Cin, cout)
        b = jnp.dot(params[f'{name}_dec_b'], params[f'{name}_head_w'],
                    precision=PREC) + params[f'{name}_head_b']        # (cout,)
        Ws.append(W)
        bs.append(b)
    W_all = jnp.concatenate(Ws, axis=1)                               # (Cin, C_total)
    b_all = jnp.concatenate(bs, axis=0)                               # (C_total,)
    return jnp.transpose(W_all), b_all                                # (C_total, Cin), (C_total,)


def build_static(params, classes, in_channels, H, W, logits_dtype=jnp.float32):
    """One-time setup: composed head weights, bilinear matrices (lane-padded),
    head-channel offsets and xy/z split indices (hoisted out of forward)."""
    assert H % 4 == 0 and W % 4 == 0
    h, w = H // 4, W // 4
    Wp = _round_up(W, 128)
    wT_all, b_all = compose_head_weights(params, classes)
    Uh = bilinear_matrix(H, h)                                        # (H, h)
    Uw = bilinear_matrix(W, w)                                        # (W, w)
    UwT = jnp.zeros((w, Wp), jnp.float32).at[:, :W].set(Uw.T)         # lane-padded

    head_sizes = list(head_out_channels(classes).values())
    offs = np.cumsum([0] + head_sizes)
    n_xyz = head_sizes[2]
    xy_index = np.array([i for i in range(n_xyz) if i % 3 != 0]) - 1
    z_index = np.array([i for i in range(n_xyz) if i % 3 == 0]) + 2

    return dict(classes=classes, in_channels=in_channels, H=H, W=W, Wp=Wp,
                wT_all=wT_all, b_all=b_all, Uh=Uh, UwT=UwT,
                head_offsets=offs, xy_index=xy_index, z_index=z_index,
                logits_dtype=logits_dtype)


def pose_regressor_forward(x_nchw, static, hparam):
    B, Cin, H, W = x_nchw.shape
    assert (H, W) == (static['H'], static['W']) and Cin == static['in_channels']
    h, w = H // 4, W // 4

    # ---- stand-in encoder + four FPN decoders (see TODO(synk) at top) ----
    # 4x4 average pool to 1/4 resolution, kept channel-major (no transposes).
    pooled = x_nchw.reshape(B, Cin, h, 4, w, 4).mean(axis=(3, 5))     # (B, Cin, h, w)

    # ---- fused heads + bilinear x4 upsample + class-compression argmax ----
    logits_all, cat_mask = fused_heads_upsample_mask(
        pooled, static['wT_all'], static['b_all'], static['Uh'], static['UwT'],
        static['classes'], W, static['logits_dtype'])

    # ---- split concatenated channels back into per-head logits (NCHW) ----
    offs = static['head_offsets']
    mask_logits = logits_all[:, offs[0]:offs[1]]
    quat_logits = logits_all[:, offs[1]:offs[2]]
    xyz_logits = logits_all[:, offs[2]:offs[3]]
    scales_logits = logits_all[:, offs[3]:offs[4]]
    xy_logits = xyz_logits[:, static['xy_index']]
    z_logits = xyz_logits[:, static['z_index']]
    logits = {'mask': mask_logits, 'quaternion': quat_logits,
              'scales': scales_logits, 'xy': xy_logits, 'z': z_logits}

    # cat_mask == argmax(LogSoftmax(dim=1)(mask_logits), 1): LogSoftmax is
    # monotone per pixel, so the argmax is computed on raw logits in-kernel.
    # TODO(synk): gtf.class_compress (per-class logit compression) is external.
    categorical = {'mask': cat_mask}

    # TODO(synk): AggregationLayer / HoughVoting / RT calc are external modules;
    # aggregation is disabled so forward returns None here (as in PyTorch).
    agg_pred = None if not hparam['PERFORM_AGGREGATION'] else None

    return {'logits': logits, 'categorical': categorical, 'aggregated': agg_pred}


# ------------------------- pure-JAX reference (checks) ------------------------

def reference_forward(x, params, classes):
    B, Cin, H, W = x.shape
    h, w = H // 4, W // 4
    pooled = x.reshape(B, Cin, h, 4, w, 4).mean(axis=(3, 5))
    Uh = bilinear_matrix(H, h)
    Uw = bilinear_matrix(W, w)

    def head(name):
        dec = jnp.einsum('bchw,cd->bdhw', pooled, params[f'{name}_dec_w'],
                         precision=PREC) + params[f'{name}_dec_b'][None, :, None, None]
        out = jnp.einsum('bdhw,do->bohw', dec, params[f'{name}_head_w'],
                         precision=PREC) + params[f'{name}_head_b'][None, :, None, None]
        return jnp.einsum('Hh,bohw,Ww->boHW', Uh, out, Uw, precision=PREC)

    mask = head('mask')
    quat = head('rotation')
    xyz = head('translation')
    scales = head('scales')
    n_xyz = xyz.shape[1]
    xy_index = np.array([i for i in range(n_xyz) if i % 3 != 0]) - 1
    z_index = np.array([i for i in range(n_xyz) if i % 3 == 0]) + 2
    return {'mask': mask, 'quaternion': quat, 'scales': scales,
            'xy': xyz[:, xy_index], 'z': xyz[:, z_index]}


# ----------------------------------- main --------------------------------------

if __name__ == "__main__":
    classes = 2                               # module default
    B, in_channels, H, W = 2, 3, 16, 16       # small shapes consistent w/ forward

    HPARAM = {
        'NUMPY_INTRINSICS': np.array([[600.0, 0.0, 320.0],
                                      [0.0, 600.0, 240.0],
                                      [0.0, 0.0, 1.0]], dtype=np.float32),
        'PERFORM_AGGREGATION': False,
    }
    intrinsics = jnp.asarray(HPARAM['NUMPY_INTRINSICS'])
    inv_intrinsics = jnp.linalg.inv(intrinsics)   # kept for fidelity; unused (agg off)

    key = jax.random.PRNGKey(0)
    kx, kp = jax.random.split(key)
    x = jax.random.normal(kx, (B, in_channels, H, W), dtype=jnp.float32)

    params = init_params(kp, in_channels, classes)
    static = build_static(params, classes, in_channels, H, W,
                          logits_dtype=LOGITS_DTYPE)

    forward_fn = jax.jit(lambda inp: pose_regressor_forward(inp, static, HPARAM))
    out = forward_fn(x)
    jax.block_until_ready(out)

    # ---- shape / dtype checks ----
    assert out['logits']['mask'].shape == (B, classes, H, W)
    assert out['logits']['quaternion'].shape == (B, 4 * (classes - 1), H, W)
    assert out['logits']['scales'].shape == (B, 3 * (classes - 1), H, W)
    assert out['logits']['xy'].shape == (B, 2 * (classes - 1), H, W)
    assert out['logits']['z'].shape == (B, (classes - 1), H, W)
    assert out['categorical']['mask'].shape == (B, H, W)
    assert out['categorical']['mask'].dtype == jnp.int32
    assert out['aggregated'] is None

    # ---- numerical check against a pure-JAX reference of the stand-in path ----
    ref = reference_forward(x, params, classes)
    if LOGITS_DTYPE == jnp.float32:
        tol = dict(rtol=1e-2, atol=1e-3)
    else:
        tol = dict(rtol=5e-2, atol=5e-2)
    for k in ('mask', 'quaternion', 'scales', 'xy', 'z'):
        np.testing.assert_allclose(np.asarray(out['logits'][k], dtype=np.float32),
                                   np.asarray(ref[k]), **tol)
    if LOGITS_DTYPE == jnp.float32:
        # categorical mask must equal argmax of the returned mask logits exactly
        assert bool(jnp.all(out['categorical']['mask'] ==
                            jnp.argmax(out['logits']['mask'], axis=1)))

    print("KERNEL_OK")
</pallas_src>

<mosaic_0001>
module attributes {stable_mosaic.version = 11 : i64} {
  func.func @kernel(%arg0: i32, %arg1: i32, %arg2: memref<12x3xf32, #tpu.memory_space<smem>>, %arg3: memref<12xf32, #tpu.memory_space<smem>>, %arg4: memref<1x3x4x4xf32, #tpu.memory_space<vmem>>, %arg5: memref<16x4xf32, #tpu.memory_space<vmem>>, %arg6: memref<4x128xf32, #tpu.memory_space<vmem>>, %arg7: memref<1x12x16x128xf32, #tpu.memory_space<vmem>>, %arg8: memref<1x16x128xi32, #tpu.memory_space<vmem>>) attributes {dimension_semantics = [#tpu.dimension_semantics<parallel>, #tpu.dimension_semantics<parallel>], iteration_bounds = array<i64: 2, 1>, scalar_prefetch = 0 : i64, scratch_operands = 0 : i64, tpu.core_type = #tpu.core_type<tc>, window_params = [{transform_indices = @transform_0, window_bounds = array<i64: 12, 3>}, {transform_indices = @transform_1, window_bounds = array<i64: 12>}, {transform_indices = @transform_2, window_bounds = array<i64: 1, 3, 4, 4>}, {transform_indices = @transform_3, window_bounds = array<i64: 16, 4>}, {pipeline_mode = #tpu.pipeline_mode<synchronous>, transform_indices = @transform_4, window_bounds = array<i64: 4, 128>}, {transform_indices = @transform_5, window_bounds = array<i64: 1, 12, 16, 128>}, {transform_indices = @transform_6, window_bounds = array<i64: 1, 16, 128>}]} {
    %c0 = arith.constant 0 : index
    %c0_0 = arith.constant 0 : index
    %0 = vector.load %arg5[%c0, %c0_0] : memref<16x4xf32, #tpu.memory_space<vmem>>, vector<16x4xf32>
    %c0_1 = arith.constant 0 : index
    %c0_2 = arith.constant 0 : index
    %1 = vector.load %arg6[%c0_1, %c0_2] : memref<4x128xf32, #tpu.memory_space<vmem>>, vector<4x128xf32>
    %c0_3 = arith.constant 0 : index
    %c0_4 = arith.constant 0 : index
    %c0_5 = arith.constant 0 : index
    %c0_6 = arith.constant 0 : index
    %2 = vector.load %arg4[%c0_3, %c0_4, %c0_5, %c0_6] : memref<1x3x4x4xf32, #tpu.memory_space<vmem>>, vector<1x1x4x4xf32>
    %3 = vector.shape_cast %2 : vector<1x1x4x4xf32> to vector<4x4xf32>
    %cst = arith.constant dense<0.000000e+00> : vector<4x128xf32>
    %4 = tpu.matmul %3, %1, %cst {dimension_numbers = #tpu.dot_dimension_numbers<[1], [0], [0], [1], [0, 0, 1, 1], [], []>} : vector<4x4xf32>, vector<4x128xf32>, vector<4x128xf32> -> vector<4x128xf32>
    %c0_7 = arith.constant 0 : index
    %c1 = arith.constant 1 : index
    %c0_8 = arith.constant 0 : index
    %c0_9 = arith.constant 0 : index
    %5 = vector.load %arg4[%c0_7, %c1, %c0_8, %c0_9] : memref<1x3x4x4xf32, #tpu.memory_space<vmem>>, vector<1x1x4x4xf32>
    %6 = vector.shape_cast %5 : vector<1x1x4x4xf32> to vector<4x4xf32>
    %cst_10 = arith.constant dense<0.000000e+00> : vector<4x128xf32>
    %7 = tpu.matmul %6, %1, %cst_10 {dimension_numbers = #tpu.dot_dimension_numbers<[1], [0], [0], [1], [0, 0, 1, 1], [], []>} : vector<4x4xf32>, vector<4x128xf32>, vector<4x128xf32> -> vector<4x128xf32>
    %c0_11 = arith.constant 0 : index
    %c2 = arith.constant 2 : index
    %c0_12 = arith.constant 0 : index
    %c0_13 = arith.constant 0 : index
    %8 = vector.load %arg4[%c0_11, %c2, %c0_12, %c0_13] : memref<1x3x4x4xf32, #tpu.memory_space<vmem>>, vector<1x1x4x4xf32>
    %9 = vector.shape_cast %8 : vector<1x1x4x4xf32> to vector<4x4xf32>
    %cst_14 = arith.constant dense<0.000000e+00> : vector<4x128xf32>
    %10 = tpu.matmul %9, %1, %cst_14 {dimension_numbers = #tpu.dot_dimension_numbers<[1], [0], [0], [1], [0, 0, 1, 1], [], []>} : vector<4x4xf32>, vector<4x128xf32>, vector<4x128xf32> -> vector<4x128xf32>
    %c0_15 = arith.constant 0 : index
    %11 = memref.load %arg3[%c0_15] : memref<12xf32, #tpu.memory_space<smem>>
    %c0_16 = arith.constant 0 : index
    %c0_17 = arith.constant 0 : index
    %12 = memref.load %arg2[%c0_16, %c0_17] : memref<12x3xf32, #tpu.memory_space<smem>>
    %13 = vector.broadcast %12 : f32 to vector<4x128xf32>
    %14 = arith.mulf %13, %4 : vector<4x128xf32>
    %15 = vector.broadcast %11 : f32 to vector<4x128xf32>
    %16 = arith.addf %15, %14 : vector<4x128xf32>
    %c0_18 = arith.constant 0 : index
    %c1_19 = arith.constant 1 : index
    %17 = memref.load %arg2[%c0_18, %c1_19] : memref<12x3xf32, #tpu.memory_space<smem>>
    %18 = vector.broadcast %17 : f32 to vector<4x128xf32>
    %19 = arith.mulf %18, %7 : vector<4x128xf32>
    %20 = arith.addf %16, %19 : vector<4x128xf32>
    %c0_20 = arith.constant 0 : index
    %c2_21 = arith.constant 2 : index
    %21 = memref.load %arg2[%c0_20, %c2_21] : memref<12x3xf32, #tpu.memory_space<smem>>
    %22 = vector.broadcast %21 : f32 to vector<4x128xf32>
    %23 = arith.mulf %22, %10 : vector<4x128xf32>
    %24 = arith.addf %20, %23 : vector<4x128xf32>
    %cst_22 = arith.constant dense<0.000000e+00> : vector<16x128xf32>
    %25 = tpu.matmul %0, %24, %cst_22 {dimension_numbers = #tpu.dot_dimension_numbers<[1], [0], [0], [1], [0, 0, 1, 1], [], []>} : vector<16x4xf32>, vector<4x128xf32>, vector<16x128xf32> -> vector<16x128xf32>
    %c0_23 = arith.constant 0 : index
    %c0_24 = arith.constant 0 : index
    %c0_25 = arith.constant 0 : index
    %c0_26 = arith.constant 0 : index
    %26 = vector.load %arg7[%c0_23, %c0_24, %c0_25, %c0_26] : memref<1x12x16x128xf32, #tpu.memory_space<vmem>>, vector<1x1x16x128xf32>
    %27 = vector.shape_cast %26 : vector<1x1x16x128xf32> to vector<16x128xf32>
    %28 = vector.shape_cast %25 : vector<16x128xf32> to vector<1x1x16x128xf32>
    tpu.vector_store %arg7[%c0_23, %c0_24, %c0_25, %c0_26], %28 {strides = array<i32>} : memref<1x12x16x128xf32, #tpu.memory_space<vmem>>, vector<1x1x16x128xf32>,
    %c0_i32 = arith.constant 0 : i32
    %29 = vector.broadcast %c0_i32 : i32 to vector<16x128xi32>
    %c1_27 = arith.constant 1 : index
    %30 = memref.load %arg3[%c1_27] : memref<12xf32, #tpu.memory_space<smem>>
    %c1_28 = arith.constant 1 : index
    %c0_29 = arith.constant 0 : index
    %31 = memref.load %arg2[%c1_28, %c0_29] : memref<12x3xf32, #tpu.memory_space<smem>>
    %32 = vector.broadcast %31 : f32 to vector<4x128xf32>
    %33 = arith.mulf %32, %4 : vector<4x128xf32>
    %34 = vector.broadcast %30 : f32 to vector<4x128xf32>
    %35 = arith.addf %34, %33 : vector<4x128xf32>
    %c1_30 = arith.constant 1 : index
    %c1_31 = arith.constant 1 : index
    %36 = memref.load %arg2[%c1_30, %c1_31] : memref<12x3xf32, #tpu.memory_space<smem>>
    %37 = vector.broadcast %36 : f32 to vector<4x128xf32>
    %38 = arith.mulf %37, %7 : vector<4x128xf32>
    %39 = arith.addf %35, %38 : vector<4x128xf32>
    %c1_32 = arith.constant 1 : index
    %c2_33 = arith.constant 2 : index
    %40 = memref.load %arg2[%c1_32, %c2_33] : memref<12x3xf32, #tpu.memory_space<smem>>
    %41 = vector.broadcast %40 : f32 to vector<4x128xf32>
    %42 = arith.mulf %41, %10 : vector<4x128xf32>
    %43 = arith.addf %39, %42 : vector<4x128xf32>
    %cst_34 = arith.constant dense<0.000000e+00> : vector<16x128xf32>
    %44 = tpu.matmul %0, %43, %cst_34 {dimension_numbers = #tpu.dot_dimension_numbers<[1], [0], [0], [1], [0, 0, 1, 1], [], []>} : vector<16x4xf32>, vector<4x128xf32>, vector<16x128xf32> -> vector<16x128xf32>
    %c0_35 = arith.constant 0 : index
    %c1_36 = arith.constant 1 : index
    %c0_37 = arith.constant 0 : index
    %c0_38 = arith.constant 0 : index
    %45 = vector.load %arg7[%c0_35, %c1_36, %c0_37, %c0_38] : memref<1x12x16x128xf32, #tpu.memory_space<vmem>>, vector<1x1x16x128xf32>
    %46 = vector.shape_cast %45 : vector<1x1x16x128xf32> to vector<16x128xf32>
    %47 = vector.shape_cast %44 : vector<16x128xf32> to vector<1x1x16x128xf32>
    tpu.vector_store %arg7[%c0_35, %c1_36, %c0_37, %c0_38], %47 {strides = array<i32>} : memref<1x12x16x128xf32, #tpu.memory_space<vmem>>, vector<1x1x16x128xf32>,
    %48 = arith.cmpf ogt, %44, %25 : vector<16x128xf32>
    %c1_i32 = arith.constant 1 : i32
    %49 = vector.broadcast %c1_i32 : i32 to vector<16x128xi32>
    %50 = arith.select %48, %49, %29 : vector<16x128xi1>, vector<16x128xi32>
    %c0_39 = arith.constant 0 : index
    %c0_40 = arith.constant 0 : index
    %c0_41 = arith.constant 0 : index
    %51 = vector.load %arg8[%c0_39, %c0_40, %c0_41] : memref<1x16x128xi32, #tpu.memory_space<vmem>>, vector<1x16x128xi32>
    %52 = vector.shape_cast %51 : vector<1x16x128xi32> to vector<16x128xi32>
    %53 = vector.shape_cast %50 : vector<16x128xi32> to vector<1x16x128xi32>
    tpu.vector_store %arg8[%c0_39, %c0_40, %c0_41], %53 {strides = array<i32>} : memref<1x16x128xi32, #tpu.memory_space<vmem>>, vector<1x16x128xi32>,
    %c2_42 = arith.constant 2 : index
    %54 = memref.load %arg3[%c2_42] : memref<12xf32, #tpu.memory_space<smem>>
    %c2_43 = arith.constant 2 : index
    %c0_44 = arith.constant 0 : index
    %55 = memref.load %arg2[%c2_43, %c0_44] : memref<12x3xf32, #tpu.memory_space<smem>>
    %56 = vector.broadcast %55 : f32 to vector<4x128xf32>
    %57 = arith.mulf %56, %4 : vector<4x128xf32>
    %58 = vector.broadcast %54 : f32 to vector<4x128xf32>
    %59 = arith.addf %58, %57 : vector<4x128xf32>
    %c2_45 = arith.constant 2 : index
    %c1_46 = arith.constant 1 : index
    %60 = memref.load %arg2[%c2_45, %c1_46] : memref<12x3xf32, #tpu.memory_space<smem>>
    %61 = vector.broadcast %60 : f32 to vector<4x128xf32>
    %62 = arith.mulf %61, %7 : vector<4x128xf32>
    %63 = arith.addf %59, %62 : vector<4x128xf32>
    %c2_47 = arith.constant 2 : index
    %c2_48 = arith.constant 2 : index
    %64 = memref.load %arg2[%c2_47, %c2_48] : memref<12x3xf32, #tpu.memory_space<smem>>
    %65 = vector.broadcast %64 : f32 to vector<4x128xf32>
    %66 = arith.mulf %65, %10 : vector<4x128xf32>
    %67 = arith.addf %63, %66 : vector<4x128xf32>
    %cst_49 = arith.constant dense<0.000000e+00> : vector<16x128xf32>
    %68 = tpu.matmul %0, %67, %cst_49 {dimension_numbers = #tpu.dot_dimension_numbers<[1], [0], [0], [1], [0, 0, 1, 1], [], []>} : vector<16x4xf32>, vector<4x128xf32>, vector<16x128xf32> -> vector<16x128xf32>
    %c0_50 = arith.constant 0 : index
    %c2_51 = arith.constant 2 : index
    %c0_52 = arith.constant 0 : index
    %c0_53 = arith.constant 0 : index
    %69 = vector.load %arg7[%c0_50, %c2_51, %c0_52, %c0_53] : memref<1x12x16x128xf32, #tpu.memory_space<vmem>>, vector<1x1x16x128xf32>
    %70 = vector.shape_cast %69 : vector<1x1x16x128xf32> to vector<16x128xf32>
    %71 = vector.shape_cast %68 : vector<16x128xf32> to vector<1x1x16x128xf32>
    tpu.vector_store %arg7[%c0_50, %c2_51, %c0_52, %c0_53], %71 {strides = array<i32>} : memref<1x12x16x128xf32, #tpu.memory_space<vmem>>, vector<1x1x16x128xf32>,
    %c3 = arith.constant 3 : index
    %72 = memref.load %arg3[%c3] : memref<12xf32, #tpu.memory_space<smem>>
    %c3_54 = arith.constant 3 : index
    %c0_55 = arith.constant 0 : index
    %73 = memref.load %arg2[%c3_54, %c0_55] : memref<12x3xf32, #tpu.memory_space<smem>>
    %74 = vector.broadcast %73 : f32 to vector<4x128xf32>
    %75 = arith.mulf %74, %4 : vector<4x128xf32>
    %76 = vector.broadcast %72 : f32 to vector<4x128xf32>
    %77 = arith.addf %76, %75 : vector<4x128xf32>
    %c3_56 = arith.constant 3 : index
    %c1_57 = arith.constant 1 : index
    %78 = memref.load %arg2[%c3_56, %c1_57] : memref<12x3xf32, #tpu.memory_space<smem>>
    %79 = vector.broadcast %78 : f32 to vector<4x128xf32>
    %80 = arith.mulf %79, %7 : vector<4x128xf32>
    %81 = arith.addf %77, %80 : vector<4x128xf32>
    %c3_58 = arith.constant 3 : index
    %c2_59 = arith.constant 2 : index
    %82 = memref.load %arg2[%c3_58, %c2_59] : memref<12x3xf32, #tpu.memory_space<smem>>
    %83 = vector.broadcast %82 : f32 to vector<4x128xf32>
    %84 = arith.mulf %83, %10 : vector<4x128xf32>
    %85 = arith.addf %81, %84 : vector<4x128xf32>
    %cst_60 = arith.constant dense<0.000000e+00> : vector<16x128xf32>
    %86 = tpu.matmul %0, %85, %cst_60 {dimension_numbers = #tpu.dot_dimension_numbers<[1], [0], [0], [1], [0, 0, 1, 1], [], []>} : vector<16x4xf32>, vector<4x128xf32>, vector<16x128xf32> -> vector<16x128xf32>
    %c0_61 = arith.constant 0 : index
    %c3_62 = arith.constant 3 : index
    %c0_63 = arith.constant 0 : index
    %c0_64 = arith.constant 0 : index
    %87 = vector.load %arg7[%c0_61, %c3_62, %c0_63, %c0_64] : memref<1x12x16x128xf32, #tpu.memory_space<vmem>>, vector<1x1x16x128xf32>
    %88 = vector.shape_cast %87 : vector<1x1x16x128xf32> to vector<16x128xf32>
    %89 = vector.shape_cast %86 : vector<16x128xf32> to vector<1x1x16x128xf32>
    tpu.vector_store %arg7[%c0_61, %c3_62, %c0_63, %c0_64], %89 {strides = array<i32>} : memref<1x12x16x128xf32, #tpu.memory_space<vmem>>, vector<1x1x16x128xf32>,
    %c4 = arith.constant 4 : index
    %90 = memref.load %arg3[%c4] : memref<12xf32, #tpu.memory_space<smem>>
    %c4_65 = arith.constant 4 : index
    %c0_66 = arith.constant 0 : index
    %91 = memref.load %arg2[%c4_65, %c0_66] : memref<12x3xf32, #tpu.memory_space<smem>>
    %92 = vector.broadcast %91 : f32 to vector<4x128xf32>
    %93 = arith.mulf %92, %4 : vector<4x128xf32>
    %94 = vector.broadcast %90 : f32 to vector<4x128xf32>
    %95 = arith.addf %94, %93 : vector<4x128xf32>
    %c4_67 = arith.constant 4 : index
    %c1_68 = arith.constant 1 : index
    %96 = memref.load %arg2[%c4_67, %c1_68] : memref<12x3xf32, #tpu.memory_space<smem>>
    %97 = vector.broadcast %96 : f32 to vector<4x128xf32>
    %98 = arith.mulf %97, %7 : vector<4x128xf32>
    %99 = arith.addf %95, %98 : vector<4x128xf32>
    %c4_69 = arith.constant 4 : index
    %c2_70 = arith.constant 2 : index
    %100 = memref.load %arg2[%c4_69, %c2_70] : memref<12x3xf32, #tpu.memory_space<smem>>
    %101 = vector.broadcast %100 : f32 to vector<4x128xf32>
    %102 = arith.mulf %101, %10 : vector<4x128xf32>
    %103 = arith.addf %99, %102 : vector<4x128xf32>
    %cst_71 = arith.constant dense<0.000000e+00> : vector<16x128xf32>
    %104 = tpu.matmul %0, %103, %cst_71 {dimension_numbers = #tpu.dot_dimension_numbers<[1], [0], [0], [1], [0, 0, 1, 1], [], []>} : vector<16x4xf32>, vector<4x128xf32>, vector<16x128xf32> -> vector<16x128xf32>
    %c0_72 = arith.constant 0 : index
    %c4_73 = arith.constant 4 : index
    %c0_74 = arith.constant 0 : index
    %c0_75 = arith.constant 0 : index
    %105 = vector.load %arg7[%c0_72, %c4_73, %c0_74, %c0_75] : memref<1x12x16x128xf32, #tpu.memory_space<vmem>>, vector<1x1x16x128xf32>
    %106 = vector.shape_cast %105 : vector<1x1x16x128xf32> to vector<16x128xf32>
    %107 = vector.shape_cast %104 : vector<16x128xf32> to vector<1x1x16x128xf32>
    tpu.vector_store %arg7[%c0_72, %c4_73, %c0_74, %c0_75], %107 {strides = array<i32>} : memref<1x12x16x128xf32, #tpu.memory_space<vmem>>, vector<1x1x16x128xf32>,
    %c5 = arith.constant 5 : index
    %108 = memref.load %arg3[%c5] : memref<12xf32, #tpu.memory_space<smem>>
    %c5_76 = arith.constant 5 : index
    %c0_77 = arith.constant 0 : index
    %109 = memref.load %arg2[%c5_76, %c0_77] : memref<12x3xf32, #tpu.memory_space<smem>>
    %110 = vector.broadcast %109 : f32 to vector<4x128xf32>
    %111 = arith.mulf %110, %4 : vector<4x128xf32>
    %112 = vector.broadcast %108 : f32 to vector<4x128xf32>
    %113 = arith.addf %112, %111 : vector<4x128xf32>
    %c5_78 = arith.constant 5 : index
    %c1_79 = arith.constant 1 : index
    %114 = memref.load %arg2[%c5_78, %c1_79] : memref<12x3xf32, #tpu.memory_space<smem>>
    %115 = vector.broadcast %114 : f32 to vector<4x128xf32>
    %116 = arith.mulf %115, %7 : vector<4x128xf32>
    %117 = arith.addf %113, %116 : vector<4x128xf32>
    %c5_80 = arith.constant 5 : index
    %c2_81 = arith.constant 2 : index
    %118 = memref.load %arg2[%c5_80, %c2_81] : memref<12x3xf32, #tpu.memory_space<smem>>
    %119 = vector.broadcast %118 : f32 to vector<4x128xf32>
    %120 = arith.mulf %119, %10 : vector<4x128xf32>
    %121 = arith.addf %117, %120 : vector<4x128xf32>
    %cst_82 = arith.constant dense<0.000000e+00> : vector<16x128xf32>
    %122 = tpu.matmul %0, %121, %cst_82 {dimension_numbers = #tpu.dot_dimension_numbers<[1], [0], [0], [1], [0, 0, 1, 1], [], []>} : vector<16x4xf32>, vector<4x128xf32>, vector<16x128xf32> -> vector<16x128xf32>
    %c0_83 = arith.constant 0 : index
    %c5_84 = arith.constant 5 : index
    %c0_85 = arith.constant 0 : index
    %c0_86 = arith.constant 0 : index
    %123 = vector.load %arg7[%c0_83, %c5_84, %c0_85, %c0_86] : memref<1x12x16x128xf32, #tpu.memory_space<vmem>>, vector<1x1x16x128xf32>
    %124 = vector.shape_cast %123 : vector<1x1x16x128xf32> to vector<16x128xf32>
    %125 = vector.shape_cast %122 : vector<16x128xf32> to vector<1x1x16x128xf32>
    tpu.vector_store %arg7[%c0_83, %c5_84, %c0_85, %c0_86], %125 {strides = array<i32>} : memref<1x12x16x128xf32, #tpu.memory_space<vmem>>, vector<1x1x16x128xf32>,
    %c6 = arith.constant 6 : index
    %126 = memref.load %arg3[%c6] : memref<12xf32, #tpu.memory_space<smem>>
    %c6_87 = arith.constant 6 : index
    %c0_88 = arith.constant 0 : index
    %127 = memref.load %arg2[%c6_87, %c0_88] : memref<12x3xf32, #tpu.memory_space<smem>>
    %128 = vector.broadcast %127 : f32 to vector<4x128xf32>
    %129 = arith.mulf %128, %4 : vector<4x128xf32>
    %130 = vector.broadcast %126 : f32 to vector<4x128xf32>
    %131 = arith.addf %130, %129 : vector<4x128xf32>
    %c6_89 = arith.constant 6 : index
    %c1_90 = arith.constant 1 : index
    %132 = memref.load %arg2[%c6_89, %c1_90] : memref<12x3xf32, #tpu.memory_space<smem>>
    %133 = vector.broadcast %132 : f32 to vector<4x128xf32>
    %134 = arith.mulf %133, %7 : vector<4x128xf32>
    %135 = arith.addf %131, %134 : vector<4x128xf32>
    %c6_91 = arith.constant 6 : index
    %c2_92 = arith.constant 2 : index
    %136 = memref.load %arg2[%c6_91, %c2_92] : memref<12x3xf32, #tpu.memory_space<smem>>
    %137 = vector.broadcast %136 : f32 to vector<4x128xf32>
    %138 = arith.mulf %137, %10 : vector<4x128xf32>
    %139 = arith.addf %135, %138 : vector<4x128xf32>
    %cst_93 = arith.constant dense<0.000000e+00> : vector<16x128xf32>
    %140 = tpu.matmul %0, %139, %cst_93 {dimension_numbers = #tpu.dot_dimension_numbers<[1], [0], [0], [1], [0, 0, 1, 1], [], []>} : vector<16x4xf32>, vector<4x128xf32>, vector<16x128xf32> -> vector<16x128xf32>
    %c0_94 = arith.constant 0 : index
    %c6_95 = arith.constant 6 : index
    %c0_96 = arith.constant 0 : index
    %c0_97 = arith.constant 0 : index
    %141 = vector.load %arg7[%c0_94, %c6_95, %c0_96, %c0_97] : memref<1x12x16x128xf32, #tpu.memory_space<vmem>>, vector<1x1x16x128xf32>
    %142 = vector.shape_cast %141 : vector<1x1x16x128xf32> to vector<16x128xf32>
    %143 = vector.shape_cast %140 : vector<16x128xf32> to vector<1x1x16x128xf32>
    tpu.vector_store %arg7[%c0_94, %c6_95, %c0_96, %c0_97], %143 {strides = array<i32>} : memref<1x12x16x128xf32, #tpu.memory_space<vmem>>, vector<1x1x16x128xf32>,
    %c7 = arith.constant 7 : index
    %144 = memref.load %arg3[%c7] : memref<12xf32, #tpu.memory_space<smem>>
    %c7_98 = arith.constant 7 : index
    %c0_99 = arith.constant 0 : index
    %145 = memref.load %arg2[%c7_98, %c0_99] : memref<12x3xf32, #tpu.memory_space<smem>>
    %146 = vector.broadcast %145 : f32 to vector<4x128xf32>
    %147 = arith.mulf %146, %4 : vector<4x128xf32>
    %148 = vector.broadcast %144 : f32 to vector<4x128xf32>
    %149 = arith.addf %148, %147 : vector<4x128xf32>
    %c7_100 = arith.constant 7 : index
    %c1_101 = arith.constant 1 : index
    %150 = memref.load %arg2[%c7_100, %c1_101] : memref<12x3xf32, #tpu.memory_space<smem>>
    %151 = vector.broadcast %150 : f32 to vector<4x128xf32>
    %152 = arith.mulf %151, %7 : vector<4x128xf32>
    %153 = arith.addf %149, %152 : vector<4x128xf32>
    %c7_102 = arith.constant 7 : index
    %c2_103 = arith.constant 2 : index
    %154 = memref.load %arg2[%c7_102, %c2_103] : memref<12x3xf32, #tpu.memory_space<smem>>
    %155 = vector.broadcast %154 : f32 to vector<4x128xf32>
    %156 = arith.mulf %155, %10 : vector<4x128xf32>
    %157 = arith.addf %153, %156 : vector<4x128xf32>
    %cst_104 = arith.constant dense<0.000000e+00> : vector<16x128xf32>
    %158 = tpu.matmul %0, %157, %cst_104 {dimension_numbers = #tpu.dot_dimension_numbers<[1], [0], [0], [1], [0, 0, 1, 1], [], []>} : vector<16x4xf32>, vector<4x128xf32>, vector<16x128xf32> -> vector<16x128xf32>
    %c0_105 = arith.constant 0 : index
    %c7_106 = arith.constant 7 : index
    %c0_107 = arith.constant 0 : index
    %c0_108 = arith.constant 0 : index
    %159 = vector.load %arg7[%c0_105, %c7_106, %c0_107, %c0_108] : memref<1x12x16x128xf32, #tpu.memory_space<vmem>>, vector<1x1x16x128xf32>
    %160 = vector.shape_cast %159 : vector<1x1x16x128xf32> to vector<16x128xf32>
    %161 = vector.shape_cast %158 : vector<16x128xf32> to vector<1x1x16x128xf32>
    tpu.vector_store %arg7[%c0_105, %c7_106, %c0_107, %c0_108], %161 {strides = array<i32>} : memref<1x12x16x128xf32, #tpu.memory_space<vmem>>, vector<1x1x16x128xf32>,
    %c8 = arith.constant 8 : index
    %162 = memref.load %arg3[%c8] : memref<12xf32, #tpu.memory_space<smem>>
    %c8_109 = arith.constant 8 : index
    %c0_110 = arith.constant 0 : index
    %163 = memref.load %arg2[%c8_109, %c0_110] : memref<12x3xf32, #tpu.memory_space<smem>>
    %164 = vector.broadcast %163 : f32 to vector<4x128xf32>
    %165 = arith.mulf %164, %4 : vector<4x128xf32>
    %166 = vector.broadcast %162 : f32 to vector<4x128xf32>
    %167 = arith.addf %166, %165 : vector<4x128xf32>
    %c8_111 = arith.constant 8 : index
    %c1_112 = arith.constant 1 : index
    %168 = memref.load %arg2[%c8_111, %c1_112] : memref<12x3xf32, #tpu.memory_space<smem>>
    %169 = vector.broadcast %168 : f32 to vector<4x128xf32>
    %170 = arith.mulf %169, %7 : vector<4x128xf32>
    %171 = arith.addf %167, %170 : vector<4x128xf32>
    %c8_113 = arith.constant 8 : index
    %c2_114 = arith.constant 2 : index
    %172 = memref.load %arg2[%c8_113, %c2_114] : memref<12x3xf32, #tpu.memory_space<smem>>
    %173 = vector.broadcast %172 : f32 to vector<4x128xf32>
    %174 = arith.mulf %173, %10 : vector<4x128xf32>
    %175 = arith.addf %171, %174 : vector<4x128xf32>
    %cst_115 = arith.constant dense<0.000000e+00> : vector<16x128xf32>
    %176 = tpu.matmul %0, %175, %cst_115 {dimension_numbers = #tpu.dot_dimension_numbers<[1], [0], [0], [1], [0, 0, 1, 1], [], []>} : vector<16x4xf32>, vector<4x128xf32>, vector<16x128xf32> -> vector<16x128xf32>
    %c0_116 = arith.constant 0 : index
    %c8_117 = arith.constant 8 : index
    %c0_118 = arith.constant 0 : index
    %c0_119 = arith.constant 0 : index
    %177 = vector.load %arg7[%c0_116, %c8_117, %c0_118, %c0_119] : memref<1x12x16x128xf32, #tpu.memory_space<vmem>>, vector<1x1x16x128xf32>
    %178 = vector.shape_cast %177 : vector<1x1x16x128xf32> to vector<16x128xf32>
    %179 = vector.shape_cast %176 : vector<16x128xf32> to vector<1x1x16x128xf32>
    tpu.vector_store %arg7[%c0_116, %c8_117, %c0_118, %c0_119], %179 {strides = array<i32>} : memref<1x12x16x128xf32, #tpu.memory_space<vmem>>, vector<1x1x16x128xf32>,
    %c9 = arith.constant 9 : index
    %180 = memref.load %arg3[%c9] : memref<12xf32, #tpu.memory_space<smem>>
    %c9_120 = arith.constant 9 : index
    %c0_121 = arith.constant 0 : index
    %181 = memref.load %arg2[%c9_120, %c0_121] : memref<12x3xf32, #tpu.memory_space<smem>>
    %182 = vector.broadcast %181 : f32 to vector<4x128xf32>
    %183 = arith.mulf %182, %4 : vector<4x128xf32>
    %184 = vector.broadcast %180 : f32 to vector<4x128xf32>
    %185 = arith.addf %184, %183 : vector<4x128xf32>
    %c9_122 = arith.constant 9 : index
    %c1_123 = arith.constant 1 : index
    %186 = memref.load %arg2[%c9_122, %c1_123] : memref<12x3xf32, #tpu.memory_space<smem>>
    %187 = vector.broadcast %186 : f32 to vector<4x128xf32>
    %188 = arith.mulf %187, %7 : vector<4x128xf32>
    %189 = arith.addf %185, %188 : vector<4x128xf32>
    %c9_124 = arith.constant 9 : index
    %c2_125 = arith.constant 2 : index
    %190 = memref.load %arg2[%c9_124, %c2_125] : memref<12x3xf32, #tpu.memory_space<smem>>
    %191 = vector.broadcast %190 : f32 to vector<4x128xf32>
    %192 = arith.mulf %191, %10 : vector<4x128xf32>
    %193 = arith.addf %189, %192 : vector<4x128xf32>
    %cst_126 = arith.constant dense<0.000000e+00> : vector<16x128xf32>
    %194 = tpu.matmul %0, %193, %cst_126 {dimension_numbers = #tpu.dot_dimension_numbers<[1], [0], [0], [1], [0, 0, 1, 1], [], []>} : vector<16x4xf32>, vector<4x128xf32>, vector<16x128xf32> -> vector<16x128xf32>
    %c0_127 = arith.constant 0 : index
    %c9_128 = arith.constant 9 : index
    %c0_129 = arith.constant 0 : index
    %c0_130 = arith.constant 0 : index
    %195 = vector.load %arg7[%c0_127, %c9_128, %c0_129, %c0_130] : memref<1x12x16x128xf32, #tpu.memory_space<vmem>>, vector<1x1x16x128xf32>
    %196 = vector.shape_cast %195 : vector<1x1x16x128xf32> to vector<16x128xf32>
    %197 = vector.shape_cast %194 : vector<16x128xf32> to vector<1x1x16x128xf32>
    tpu.vector_store %arg7[%c0_127, %c9_128, %c0_129, %c0_130], %197 {strides = array<i32>} : memref<1x12x16x128xf32, #tpu.memory_space<vmem>>, vector<1x1x16x128xf32>,
    %c10 = arith.constant 10 : index
    %198 = memref.load %arg3[%c10] : memref<12xf32, #tpu.memory_space<smem>>
    %c10_131 = arith.constant 10 : index
    %c0_132 = arith.constant 0 : index
    %199 = memref.load %arg2[%c10_131, %c0_132] : memref<12x3xf32, #tpu.memory_space<smem>>
    %200 = vector.broadcast %199 : f32 to vector<4x128xf32>
    %201 = arith.mulf %200, %4 : vector<4x128xf32>
    %202 = vector.broadcast %198 : f32 to vector<4x128xf32>
    %203 = arith.addf %202, %201 : vector<4x128xf32>
    %c10_133 = arith.constant 10 : index
    %c1_134 = arith.constant 1 : index
    %204 = memref.load %arg2[%c10_133, %c1_134] : memref<12x3xf32, #tpu.memory_space<smem>>
    %205 = vector.broadcast %204 : f32 to vector<4x128xf32>
    %206 = arith.mulf %205, %7 : vector<4x128xf32>
    %207 = arith.addf %203, %206 : vector<4x128xf32>
    %c10_135 = arith.constant 10 : index
    %c2_136 = arith.constant 2 : index
    %208 = memref.load %arg2[%c10_135, %c2_136] : memref<12x3xf32, #tpu.memory_space<smem>>
    %209 = vector.broadcast %208 : f32 to vector<4x128xf32>
    %210 = arith.mulf %209, %10 : vector<4x128xf32>
    %211 = arith.addf %207, %210 : vector<4x128xf32>
    %cst_137 = arith.constant dense<0.000000e+00> : vector<16x128xf32>
    %212 = tpu.matmul %0, %211, %cst_137 {dimension_numbers = #tpu.dot_dimension_numbers<[1], [0], [0], [1], [0, 0, 1, 1], [], []>} : vector<16x4xf32>, vector<4x128xf32>, vector<16x128xf32> -> vector<16x128xf32>
    %c0_138 = arith.constant 0 : index
    %c10_139 = arith.constant 10 : index
    %c0_140 = arith.constant 0 : index
    %c0_141 = arith.constant 0 : index
    %213 = vector.load %arg7[%c0_138, %c10_139, %c0_140, %c0_141] : memref<1x12x16x128xf32, #tpu.memory_space<vmem>>, vector<1x1x16x128xf32>
    %214 = vector.shape_cast %213 : vector<1x1x16x128xf32> to vector<16x128xf32>
    %215 = vector.shape_cast %212 : vector<16x128xf32> to vector<1x1x16x128xf32>
    tpu.vector_store %arg7[%c0_138, %c10_139, %c0_140, %c0_141], %215 {strides = array<i32>} : memref<1x12x16x128xf32, #tpu.memory_space<vmem>>, vector<1x1x16x128xf32>,
    %c11 = arith.constant 11 : index
    %216 = memref.load %arg3[%c11] : memref<12xf32, #tpu.memory_space<smem>>
    %c11_142 = arith.constant 11 : index
    %c0_143 = arith.constant 0 : index
    %217 = memref.load %arg2[%c11_142, %c0_143] : memref<12x3xf32, #tpu.memory_space<smem>>
    %218 = vector.broadcast %217 : f32 to vector<4x128xf32>
    %219 = arith.mulf %218, %4 : vector<4x128xf32>
    %220 = vector.broadcast %216 : f32 to vector<4x128xf32>
    %221 = arith.addf %220, %219 : vector<4x128xf32>
    %c11_144 = arith.constant 11 : index
    %c1_145 = arith.constant 1 : index
    %222 = memref.load %arg2[%c11_144, %c1_145] : memref<12x3xf32, #tpu.memory_space<smem>>
    %223 = vector.broadcast %222 : f32 to vector<4x128xf32>
    %224 = arith.mulf %223, %7 : vector<4x128xf32>
    %225 = arith.addf %221, %224 : vector<4x128xf32>
    %c11_146 = arith.constant 11 : index
    %c2_147 = arith.constant 2 : index
    %226 = memref.load %arg2[%c11_146, %c2_147] : memref<12x3xf32, #tpu.memory_space<smem>>
    %227 = vector.broadcast %226 : f32 to vector<4x128xf32>
    %228 = arith.mulf %227, %10 : vector<4x128xf32>
    %229 = arith.addf %225, %228 : vector<4x128xf32>
    %cst_148 = arith.constant dense<0.000000e+00> : vector<16x128xf32>
    %230 = tpu.matmul %0, %229, %cst_148 {dimension_numbers = #tpu.dot_dimension_numbers<[1], [0], [0], [1], [0, 0, 1, 1], [], []>} : vector<16x4xf32>, vector<4x128xf32>, vector<16x128xf32> -> vector<16x128xf32>
    %c0_149 = arith.constant 0 : index
    %c11_150 = arith.constant 11 : index
    %c0_151 = arith.constant 0 : index
    %c0_152 = arith.constant 0 : index
    %231 = vector.load %arg7[%c0_149, %c11_150, %c0_151, %c0_152] : memref<1x12x16x128xf32, #tpu.memory_space<vmem>>, vector<1x1x16x128xf32>
    %232 = vector.shape_cast %231 : vector<1x1x16x128xf32> to vector<16x128xf32>
    %233 = vector.shape_cast %230 : vector<16x128xf32> to vector<1x1x16x128xf32>
    tpu.vector_store %arg7[%c0_149, %c11_150, %c0_151, %c0_152], %233 {strides = array<i32>} : memref<1x12x16x128xf32, #tpu.memory_space<vmem>>, vector<1x1x16x128xf32>,
    return
  }
  func.func @transform_0(%arg0: i32, %arg1: i32) -> (i32, i32) {
    %c0_i32 = arith.constant 0 : i32
    %c0_i32_0 = arith.constant 0 : i32
    %c0_i32_1 = arith.constant 0 : i32
    return %c0_i32, %c0_i32_0 : i32, i32
  }
  func.func @transform_1(%arg0: i32, %arg1: i32) -> i32 {
    %c0_i32 = arith.constant 0 : i32
    %c0_i32_0 = arith.constant 0 : i32
    return %c0_i32 : i32
  }
  func.func @transform_2(%arg0: i32, %arg1: i32) -> (i32, i32, i32, i32) {
    %c0_i32 = arith.constant 0 : i32
    %c0_i32_0 = arith.constant 0 : i32
    %c0_i32_1 = arith.constant 0 : i32
    %c0_i32_2 = arith.constant 0 : i32
    return %arg0, %c0_i32, %c0_i32_0, %c0_i32_1 : i32, i32, i32, i32
  }
  func.func @transform_3(%arg0: i32, %arg1: i32) -> (i32, i32) {
    %c0_i32 = arith.constant 0 : i32
    %c0_i32_0 = arith.constant 0 : i32
    return %arg1, %c0_i32 : i32, i32
  }
  func.func @transform_4(%arg0: i32, %arg1: i32) -> (i32, i32) {
    %c0_i32 = arith.constant 0 : i32
    %c0_i32_0 = arith.constant 0 : i32
    %c0_i32_1 = arith.constant 0 : i32
    return %c0_i32, %c0_i32_0 : i32, i32
  }
  func.func @transform_5(%arg0: i32, %arg1: i32) -> (i32, i32, i32, i32) {
    %c0_i32 = arith.constant 0 : i32
    %c0_i32_0 = arith.constant 0 : i32
    %c0_i32_1 = arith.constant 0 : i32
    return %arg0, %c0_i32, %arg1, %c0_i32_0 : i32, i32, i32, i32
  }
  func.func @transform_6(%arg0: i32, %arg1: i32) -> (i32, i32, i32) {
    %c0_i32 = arith.constant 0 : i32
    %c0_i32_0 = arith.constant 0 : i32
    return %arg0, %arg1, %c0_i32 : i32, i32, i32
  }
}

</mosaic_0001>

<bundles_post_ra>
// kernel: _lambda_.1
= control target key start
LH: loop header
LB: loop body
LE: loop exit
PB: predicated region body
PF: predicated region fallthrough
CT: control target
= control target key end

     0   :  { %s1944_s0 = inlined_call_operand.vmem [shape: f32[12,3], index: 0, kind: input, shape index: {}]   ;;  %s1945_s1 = inlined_call_operand.vmem [shape: f32[12], index: 1, kind: input, shape index: {}]   ;;  %s1946_s2 = inlined_call_operand.vmem [shape: f32[2,3,4,4], index: 2, kind: input, shape index: {}]   ;;  %s1947_s3 = inlined_call_operand.vmem [shape: f32[16,4], index: 3, kind: input, shape index: {}]   ;;  %s1948_s4 = inlined_call_operand.vmem [shape: f32[4,128], index: 4, kind: input, shape index: {}]   ;;  %s1949_s5 = inlined_call_operand.vmem [shape: f32[2,12,16,128], index: 5, kind: output, shape index: {0}]   ;;  %s1950_s6 = inlined_call_operand.hbm [shape: s32[2,16,128], index: 6, kind: output, shape index: {1}]  }
   0x1   :  { %1974 = sst [smem:[#allocation33_spill]] %s1944_s0 }
   0x2   :  { %1975 = sst [smem:[#allocation34_spill]] %s1945_s1 }
   0x3   :  { %1976 = sst [smem:[#allocation35_spill]] %s1946_s2 }
   0x4   :  { %1977 = sst [smem:[#allocation36_spill]] %s1947_s3 }
   0x5   :  { %1978 = sst [smem:[#allocation37_spill]] %s1948_s4 }
   0x6   :  { %1979 = sst [smem:[#allocation38_spill]] %s1949_s5 }
   0x7   :  { %1980 = sst [smem:[#allocation39_spill]] %s1950_s6 }
   0x8   :  { %12 = vsyncpa [#allocation4], 0 }
   0x9   :  { %13 = vsyncpa [#allocation6], 0 }
   0xa   :  { %14 = vsyncpa [#allocation3], 0 }
   0xb   :  { %16 = vsyncpa [#allocation3 + $0x1], 0  ;;  %s1501_s21 = smov 0   ;;  %s1503_s22 = smov 0  }
   0xc   :  { %s1505_s23 = smov 0   ;;  %s1507_s24 = smov 0  }
   0xd   :  { %s1509_s25 = smov 0   ;;  %s1511_s26 = smov 0  }
   0xe LB: > { %1981 = sst [smem:[#allocation11_spill]] %s1437_s21  ;;  %s1127_s27 = sadd.s32 4294967295, %s1457_s26   ;;  %s1457_s26 = sphi %s1511_s26, %s22_s26   ;;  %s1453_s25 = sphi %s1509_s25, %s2036_s25   ;;  %s1449_s24 = sphi %s1507_s24, %s2035_s24   ;;  %s1445_s23 = sphi %s1505_s23, %s2034_s23   ;;  %s1441_s22 = sphi %s1503_s22, %s2033_s22   ;;  %s1437_s21 = sphi %s1501_s21, %s2032_s21  }
   0xf   : > { %1982 = sst [smem:[#allocation12_spill]] %s1441_s22  ;;  %s1128_s28 = sadd.s32 4294967294, %s1457_s26  }
  0x10   : > { %1983 = sst [smem:[#allocation13_spill]] %s1445_s23  ;;  %s34_s29 = sadd.s32 1, %s1453_s25 }
  0x11   : > { %1984 = sst [smem:[#allocation14_spill]] %s1449_s24  ;;  %s186_s30 = sadd.s32 1, %s1445_s23 }
  0x12   : > { %1985 = sst [smem:[#allocation15_spill]] %s1453_s25  ;;  %p36_p0 = scmp.ge.s32.totalorder %s34_s29, 2 }
  0x13   : > { %1986 = sst [smem:[#allocation16_spill]] %s1457_s26  ;;  %p196_p1 = scmp.ne.s32.totalorder %s1445_s23, %s1441_s22 }
  0x14   : > { %p197_p2 = scmp.eq.s32.totalorder %s1127_s27, 1  ;;  %p202_p3 = scmp.ne.s32.totalorder %s1441_s22, %s1437_s21 }
  0x15   : > { %s2038_s29 = smov (%p36_p0, %s34_s29), 0  ;;  %p203_p5 = scmp.eq.s32.totalorder %s1128_s28, 1 }
  0x16   : > { %1987 = sst [smem:[#allocation17_spill]] %s2038_s29  ;;  %p1541_p4 = por %p197_p2, %p196_p1 }
  0x17   : > { %s181_s8 = ssub.s32 %s1453_s25, %s2038_s29  ;;  %p1129_p6 = scmp.ge.s32.totalorder %s1457_s26, 1 }
  0x18   : > { %s1988_s7 = scalar_select %p1541_p4, 1, 0 }
  0x19   : > { %p184_p7 = scmp.eq.s32.totalorder %s181_s8, 0  ;;  %p1548_p8 = por %p203_p5, %p202_p3 }
  0x1a   : > { %1989 = sst [smem:[#allocation18_spill]] %s1988_s7  ;;  %p210_p9 = scmp.lt.s32.totalorder %s1457_s26, 3 }
  0x1b   : > { %s1990_s9 = scalar_select %p1548_p8, 1, 0 }
  0x1c   : > { %s1554_s10 = scalar_select %p184_p7, %s1445_s23, %s186_s30  }
  0x1d   : > { %1991 = sst [smem:[#allocation19_spill]] %s1990_s9  ;;  %p1556_p10 = pnand %p1129_p6, %p210_p9 }
  0x1e   : > { %1992 = sst [smem:[#allocation20_spill]] %s1554_s10  ;;  %p1560_p11 = scmp.eq.s32.totalorder %s1127_s27, 0 }
  0x1f   : > { %s1995_s0 = sld [smem:[#allocation33_spill]]  ;;  %p1270_p12 = pneg %p1556_p10 }
  0x20   : > { %s1996_s1 = sld [smem:[#allocation34_spill]]  ;;  %s1459_s19 = smov [#allocation2]  }
  0x21   : > { %p1271_p13 = pnand %p1560_p11, %p1270_p12  ;;  %s1460_s20 = smov 128  }
  0x22   : > { %s1461_s27 = smov 8   ;;  %s1462_s28 = smov [#allocation5]  }
  0x24   : > { %267 = sbr.rel (%p1556_p10) target bundleno = 368 (0x170), region = 40 }
  0x25   : > { %s221_s15 = sshll.u32 %s1995_s0, 4  ;;  %s222_s15 = int_to_ptr.vmem [resolvable:$true] %s221_s15 }
  0x26   : > { %s234_s18 = sshll.u32 %s1996_s1, 4  ;;  %s235_s18 = int_to_ptr.vmem [resolvable:$true] %s234_s18 }
  0x27   : > { %1273 = dma.vmem_to_smem (!%p1271_p13), %s222_s15, 256, %s1459_s19, [#allocation4], %s1460_s20, %s1460_s20, %s1461_s27  }
  0x28   : > { %1276 = dma.vmem_to_smem (!%p1271_p13), %s235_s18, 16, %s1462_s28, [#allocation6]  }
  0x29   : > { %1424 = dma.done.wait (%p1560_p11), [#allocation4], 256  }
  0x2a   : > { %1426 = vsyncadd (%p1560_p11), [#allocation4], 4294967040 }
  0x2b   : > { %1428 = dma.done.wait (%p1560_p11), [#allocation6], 16  }
  0x2c   : > { %1430 = vsyncadd (%p1560_p11), [#allocation6], 4294967280 }
  0x2d   : > { %279 = sfence }
  0x2e   : > { %s1997_s4 = sld [smem:[#allocation37_spill]]  ;;  %vm348_vm0 = vcmask 1043456   ;;  %p318_p0 = scmp.lt.s32.totalorder %s1449_s24, 1  ;;  %vm344_vm1 = vcmask 31744  }
  0x2f   : > { %s1999_s2 = sld [smem:[#allocation35_spill]] }
  0x30   : > { %s1591_s11 = scalar_select %p318_p0, %s1449_s24, 1 }
  0x31   : > { %s1601_s16 = sld [smem:[#allocation2]] }
  0x32   : > { %1998 = sst [smem:[#allocation21_spill]] %s1591_s11  ;;  %s1258_s12 = smul.u32 12, %s1591_s11 }
  0x33   : > { %s1603_s17 = sld [smem:[#allocation5]] }
  0x34   : > { %v342_v0 = vld [vmem:[%s1997_s4] sm:$0xf]  ;;  %s1605_s18 = sld [smem:[#allocation2 + $0x1]] }
  0x35   : > { %1146 = vmatpush.msk.msra.mxu2 %vm348_vm0, %v342_v0  ;;  %1140 = vmatpush.msk.msra.mxu0 %vm348_vm0, %v342_v0  ;;  %s322_s15 = scalar_lea.vmem %s1999_s2, %s1258_s12  ;;  %s1607_s19 = sld [smem:[#allocation2 + $0x2]] }
  0x36   : > { %1143 = vmatpush.msk.msra.mxu1 %vm348_vm0, %v342_v0  ;;  %v1145_v1 = vld [vmem:[%s322_s15 + $0x8] sm:$0xf]  ;;  %v343_v2 = vld [vmem:[%s322_s15] sm:$0xf]  ;;  %v1142_v3 = vld [vmem:[%s322_s15 + $0x4] sm:$0xf] }
  0x37   : > { %1147 = vmatmul.msk.f32.vlgmr.msra.gmra.mxu2 %vm344_vm1, %v1145_v1  ;;  %1141 = vmatmul.msk.f32.vlgmr.msra.gmra.mxu0 %vm344_vm1, %v343_v2  ;;  %s1609_s20 = sld [smem:[#allocation5 + $0x1]]  ;;  %v424_v4 = vstv %s1601_s16 }
  0x38   : > { %1144 = vmatmul.msk.f32.vlgmr.msra.gmra.mxu1 %vm344_vm1, %v1142_v3  ;;  %s1611_s27 = sld [smem:[#allocation2 + $0x80]] }
  0x39   : > { %s1613_s28 = sld [smem:[#allocation2 + $0x81]]  ;;  %v426_v10 = vstv %s1603_s17 }
  0x3a   : > { %s1615_s30 = sld [smem:[#allocation2 + $0x82]]  ;;  %v429_v11 = vstv %s1605_s18 }
  0x3b   : > { %s1617_s8 = sld [smem:[#allocation5 + $0x2]]  ;;  %v433_v18 = vstv %s1607_s19 }
  0x3c   : > { %s1619_s12 = sld [smem:[#allocation2 + $0x100]] }
  0x3d   : > { %s1621_s13 = sld [smem:[#allocation2 + $0x101]]  ;;  %v474_v12 = vstv %s1609_s20 }
  0x3e   : > { %s1623_s14 = sld [smem:[#allocation2 + $0x102]]  ;;  %v472_v5 = vstv %s1611_s27 }
  0x3f   : > { %s1625_s15 = sld [smem:[#allocation5 + $0x3]]  ;;  %v477_v14 = vstv %s1613_s28 }
  0x40   : > { %s1627_s0 = sld [smem:[#allocation2 + $0x180]]  ;;  %v481_v19 = vstv %s1615_s30 }
  0x41   : > { %s1629_s1 = sld [smem:[#allocation2 + $0x181]]  ;;  %v523_v15 = vstv %s1617_s8 }
  0x42   : > { %s1631_s2 = sld [smem:[#allocation2 + $0x182]]  ;;  %v521_v6 = vstv %s1619_s12 }
  0x43   : > { %s1633_s4 = sld [smem:[#allocation5 + $0x4]]  ;;  %v526_v16 = vstv %s1621_s13 }
  0x44   : > { %s1635_s29 = sld [smem:[#allocation2 + $0x200]]  ;;  %v530_v20 = vstv %s1623_s14 }
  0x45   : > { %s1637_s25 = sld [smem:[#allocation2 + $0x201]]  ;;  %v566_v17 = vstv %s1625_s15 }
  0x46   : > { %s1639_s10 = sld [smem:[#allocation2 + $0x202]]  ;;  %v564_v7 = vstv %s1627_s0 }
  0x47   : > { %s1641_s23 = sld [smem:[#allocation5 + $0x5]]  ;;  %v569_v21 = vstv %s1629_s1 }
  0x48   : > { %s1643_s9 = sld [smem:[#allocation2 + $0x280]]  ;;  %v573_v22 = vstv %s1631_s2 }
  0x49   : > { %s1645_s21 = sld [smem:[#allocation2 + $0x281]]  ;;  %v609_v23 = vstv %s1633_s4 }
  0x4a   : > { %s1647_s26 = sld [smem:[#allocation2 + $0x282]]  ;;  %v607_v8 = vstv %s1635_s29 }
  0x4b   : > { %s1649_s7 = sld [smem:[#allocation5 + $0x6]]  ;;  %v612_v24 = vstv %s1637_s25 }
  0x4c   : > { %s1651_s6 = sld [smem:[#allocation2 + $0x300]]  ;;  %v616_v25 = vstv %s1639_s10 }
  0x4d   : > { %s1653_s24 = sld [smem:[#allocation2 + $0x301]]  ;;  %v652_v26 = vstv %s1641_s23 }
  0x4e   : > { %s1655_s5 = sld [smem:[#allocation2 + $0x302]]  ;;  %v650_v9 = vstv %s1643_s9 }
  0x4f   : > { %2000 = sst [smem:[#allocation22_spill]] %s1645_s21 }
  0x50   : > { %2001 = sst [smem:[#allocation23_spill]] %s1647_s26 }
  0x51   : > { %2002 = sst [smem:[#allocation24_spill]] %s1649_s7 }
  0x52   : > { %s1657_s22 = sld [smem:[#allocation5 + $0x7]]  ;;  %v693_v13 = vstv %s1651_s6 }
  0x53   : > { %2003 = sst [smem:[#allocation25_spill]] %s1653_s24 }
  0x54   : > { %2004 = sst [smem:[#allocation26_spill]] %s1655_s5 }
  0x55   : > { %s1659_s11 = sld [smem:[#allocation2 + $0x380]] }
  0x56   : > { %s1661_s3 = sld [smem:[#allocation2 + $0x381]] }
  0x57   : > { %s1663_s26 = sld [smem:[#allocation2 + $0x382]] }
  0x58   : > { %2005 = sst [smem:[#allocation27_spill]] %s1657_s22 }
  0x59   : > { %s1665_s7 = sld [smem:[#allocation5 + $0x8]] }
  0x5a   : > { %s1667_s21 = sld [smem:[#allocation2 + $0x400]] }
  0x5b   : > { %2006 = sst [smem:[#allocation28_spill]] %s1659_s11 }
  0x5c   : > { %2007 = sst [smem:[#allocation29_spill]] %s1661_s3 }
  0x5d   : > { %s1669_s24 = sld [smem:[#allocation2 + $0x401]]  ;;  %v745_v38 = vstv %s1663_s26 }
  0x5e   : > { %s1671_s5 = sld [smem:[#allocation2 + $0x402]] }
  0x5f   : > { %2008 = sst [smem:[#allocation30_spill]] %s1665_s7 }
  0x60   : > { %s1673_s22 = sld [smem:[#allocation5 + $0x9]]  ;;  %v779_v33 = vstv %s1667_s21 }
  0x61   : > { %s1675_s11 = sld [smem:[#allocation2 + $0x480]] }
  0x62   : > { %s1677_s3 = sld [smem:[#allocation2 + $0x481]] }
  0x63   : > { %s1681_s7 = sld [smem:[#allocation2 + $0x500]]  ;;  %v784_v40 = vstv %s1669_s24 }
  0x64   : > { %2009 = sst [smem:[#allocation31_spill]] %s1671_s5 }
  0x65   : > { %s1687_s5 = sld [smem:[#allocation2 + $0x482]] }
  0x66   : > { %s2011_s16 = sld [smem:[#allocation22_spill]]  ;;  %v824_v41 = vstv %s1673_s22 }
  0x67   : > { %s2012_s27 = sld [smem:[#allocation23_spill]]  ;;  %v822_v36 = vstv %s1675_s11 }
  0x68   : > { %2010 = sst [smem:[#allocation32_spill]] %s1677_s3 }
  0x69   : > { %s1693_s3 = sld [smem:[#allocation2 + $0x580]]  ;;  %v865_v37 = vstv %s1681_s7 }
  0x6a   : > { %s2013_s12 = sld [smem:[#allocation24_spill]] }
  0x6b   : > { %s2014_s0 = sld [smem:[#allocation25_spill]]  ;;  %v831_v45 = vstv %s1687_s5 }
  0x6c   : > { %s2015_s29 = sld [smem:[#allocation26_spill]]  ;;  %v655_v27 = vstv %s2011_s16 }
  0x6d   : > { %s2016_s9 = sld [smem:[#allocation28_spill]]  ;;  %v659_v28 = vstv %s2012_s27 }
  0x6e   : > { %s2017_s17 = sld [smem:[#allocation27_spill]] }
  0x6f   : > { %s2018_s18 = sld [smem:[#allocation29_spill]]  ;;  %v908_v46 = vstv %s1693_s3 }
  0x70   : > { %s2019_s6 = sld [smem:[#allocation30_spill]]  ;;  %v695_v29 = vstv %s2013_s12 }
  0x71   : > { %s2020_s20 = sld [smem:[#allocation31_spill]]  ;;  %v698_v30 = vstv %s2014_s0 }
  0x72   : > { %s2021_s19 = sld [smem:[#allocation32_spill]]  ;;  %v702_v31 = vstv %s2015_s29 }
  0x73   : > { %v736_v32 = vstv %s2016_s9  ;;  %s1739_s1 = sld [smem:[#allocation5 + $0xa]] }
  0x74   : > { %v738_v34 = vstv %s2017_s17  ;;  %s1745_s2 = sld [smem:[#allocation2 + $0x501]] }
  0x75   : > { %v741_v35 = vstv %s2018_s18  ;;  %s1747_s4 = sld [smem:[#allocation5 + $0xb]] }
  0x76   : > { %v781_v39 = vstv %s2019_s6  ;;  %s1753_s23 = sld [smem:[#allocation2 + $0x581]] }
  0x77   : > { %v788_v43 = vstv %s2020_s20  ;;  %s1759_s25 = sld [smem:[#allocation2 + $0x502]] }
  0x78   : > { %v827_v44 = vstv %s2021_s19  ;;  %s1763_s26 = sld [smem:[#allocation2 + $0x582]] }
  0x79   : > { %s2022_s30 = sld [smem:[#allocation36_spill]] }
  0x7a   : > { %s2023_s3 = sld [smem:[#allocation21_spill]] }
  0x7b   : > { %s2024_s22 = sld [smem:[#allocation12_spill]] }
  0x7c   : > { %s2025_s8 = sld [smem:[#allocation38_spill]] }
  0x7d   : > { %s2026_s13 = sld [smem:[#allocation14_spill]] }
  0x7e   : > { %s2027_s9 = sld [smem:[#allocation39_spill]] }
  0x80   : > { %s1259_s24 = smul.u32 192, %s2023_s3 }
  0x81   : > { %s315_s15 = sand.u32 1, %s2024_s22  }
  0x82   : > { %s1877_s14 = scalar_lea.vmem %s2025_s8, %s1259_s24  ;;  %s1137_s16 = sshll.u32 %s315_s15, 4 }
  0x83   : > { %s1257_s27 = sshll.u32 %s2026_s13, 4  ;;  %s317_s12 = scalar_lea.vmem [#allocation7], %s1137_s16 }
  0x84   : > { %s976_s17 = scalar_lea.hbm %s2027_s9, %s1257_s27  ;;  %s977_s18 = sshll.u32 %s317_s12, 4  ;;  %s978_s18 = int_to_ptr.vmem [resolvable:$true] %s977_s18 }
  0x85   : > { %s979_s6 = sshll.u32 %s976_s17, 4  ;;  %s959_s19 = scalar_lea.sflag [#allocation3], %s315_s15  ;;  %s980_s6 = int_to_ptr.hbm [resolvable:$true] %s979_s6 }
  0xb4   : > { %v1723_v42 = vpop.f32.mrf.mxu0 }
  0xb5   : > { %v1729_v47 = vpop.f32.mrf.mxu1  ;;  %v425_v48 = vmul.f32 %v424_v4, %v1723_v42  ;;  %v473_v49 = vmul.f32 %v472_v5, %v1723_v42  ;;  %v522_v50 = vmul.f32 %v521_v6, %v1723_v42  ;;  %v565_v51 = vmul.f32 %v564_v7, %v1723_v42 }
  0xb6   : > { %v430_v52 = vmul.f32 %v429_v11, %v1729_v47  ;;  %v478_v53 = vmul.f32 %v477_v14, %v1729_v47  ;;  %v527_v54 = vmul.f32 %v526_v16, %v1729_v47  ;;  %v570_v55 = vmul.f32 %v569_v21, %v1729_v47 }
  0xb7   : > { %v427_v56 = vadd.f32 %v426_v10, %v425_v48  ;;  %v475_v57 = vadd.f32 %v474_v12, %v473_v49  ;;  %v524_v58 = vadd.f32 %v523_v15, %v522_v50  ;;  %v567_v59 = vadd.f32 %v566_v17, %v565_v51 }
  0xb8   : > { %v608_v60 = vmul.f32 %v607_v8, %v1723_v42  ;;  %v613_v61 = vmul.f32 %v612_v24, %v1729_v47  ;;  %v651_v62 = vmul.f32 %v650_v9, %v1723_v42  ;;  %v656_v63 = vmul.f32 %v655_v27, %v1729_v47 }
  0xb9   : > { %v431_v0 = vadd.f32 %v430_v52, %v427_v56  ;;  %v479_v1 = vadd.f32 %v478_v53, %v475_v57  ;;  %v528_v2 = vadd.f32 %v527_v54, %v524_v58  ;;  %v571_v3 = vadd.f32 %v570_v55, %v567_v59 }
  0xba   : > { %v1749_v4 = vpop.f32.mrf.mxu2  ;;  %v610_v5 = vadd.f32 %v609_v23, %v608_v60  ;;  %v653_v6 = vadd.f32 %v652_v26, %v651_v62  ;;  %v694_v7 = vmul.f32 %v693_v13, %v1723_v42  ;;  %v699_v8 = vmul.f32 %v698_v30, %v1729_v47 }
  0xbb   : > { %v434_v9 = vmul.f32 %v433_v18, %v1749_v4  ;;  %v482_v10 = vmul.f32 %v481_v19, %v1749_v4  ;;  %v531_v11 = vmul.f32 %v530_v20, %v1749_v4  ;;  %v574_v12 = vmul.f32 %v573_v22, %v1749_v4 }
  0xbc   : > { %v614_v14 = vadd.f32 %v613_v61, %v610_v5  ;;  %v617_v13 = vmul.f32 %v616_v25, %v1749_v4  ;;  %v657_v15 = vadd.f32 %v656_v63, %v653_v6  ;;  %v660_v16 = vmul.f32 %v659_v28, %v1749_v4  ;;  %v1782_v28 = vld [vmem:[%s2022_s30] sm:$0xff]  ;;  %v341_v63 = vld [vmem:[%s2022_s30 + $0x8] sm:$0xff] }
  0xbd   : > { %v435_v17 = vadd.f32 %v434_v9, %v431_v0  ;;  %v483_v18 = vadd.f32 %v482_v10, %v479_v1  ;;  %v532_v19 = vadd.f32 %v531_v11, %v528_v2  ;;  %v575_v20 = vadd.f32 %v574_v12, %v571_v3 }
  0xbe   : > { %v618_v21 = vadd.f32 %v617_v13, %v614_v14  ;;  %v661_v22 = vadd.f32 %v660_v16, %v657_v15  ;;  %v696_v23 = vadd.f32 %v695_v29, %v694_v7  ;;  %v703_v24 = vmul.f32 %v702_v31, %v1749_v4 }
  0xbf   : > { %1150 = vmatpush.msk.msra.mxu3 %vm348_vm0, %v435_v17  ;;  %1157 = vmatpush.msk.msrb.mxu0 %vm348_vm0, %v483_v18  ;;  %v737_v25 = vmul.f32 %v736_v32, %v1723_v42  ;;  %v742_v26 = vmul.f32 %v741_v35, %v1729_v47  ;;  %v746_v27 = vmul.f32 %v745_v38, %v1749_v4  ;;  %v867_v29 = vstv %s1739_s1  ;;  %s1385_s1 = sshra.s32 %s980_s6, 4  ;;  %s1386_s1 = int_to_ptr.hbm [resolvable:$true] %s1385_s1 }
  0xc0   : > { %1166 = vmatpush.msk.msrb.mxu1 %vm348_vm0, %v532_v19  ;;  %1175 = vmatpush.msk.msrb.mxu2 %vm348_vm0, %v575_v20  ;;  %v700_v30 = vadd.f32 %v699_v8, %v696_v23  ;;  %v780_v31 = vmul.f32 %v779_v33, %v1723_v42  ;;  %v785_v32 = vmul.f32 %v784_v40, %v1729_v47  ;;  %v870_v35 = vstv %s1745_s2  ;;  %s1387_s2 = scalar_lea.hbm %s1386_s1, 16  ;;  %p1392_p5 = scmp.lt.s32.totalorder %s1386_s1, %s2027_s9 }
  0xc1   : > { %1184 = vmatpush.msk.msrb.mxu3 %vm348_vm0, %v618_v21  ;;  %1193 = vmatpush.msk.msra.mxu0 %vm348_vm0, %v661_v22  ;;  %v739_v38 = vadd.f32 %v738_v34, %v737_v25  ;;  %v789_v48 = vmul.f32 %v788_v43, %v1749_v4  ;;  %v823_v49 = vmul.f32 %v822_v36, %v1723_v42  ;;  %v910_v33 = vstv %s1747_s4  ;;  %p1388_p1 = scmp.ne.s32.totalorder %s1386_s1, %s1387_s2 }
  0xc2   : > { %v704_v50 = vadd.f32 %v703_v24, %v700_v30  ;;  %1151 = vmatmul.msk.f32.vlgmr.msra.gmra.mxu3 %vm344_vm1, %v1782_v28  ;;  %1158 = vmatmul.msk.f32.vlgmr.msrb.gmra.mxu0 %vm344_vm1, %v1782_v28  ;;  %v782_v40 = vadd.f32 %v781_v39, %v780_v31  ;;  %v828_v34 = vmul.f32 %v827_v44, %v1729_v47  ;;  %v913_v43 = vstv %s1753_s23 }
  0xc3   : > { %v743_v51 = vadd.f32 %v742_v26, %v739_v38  ;;  %1167 = vmatmul.msk.f32.vlgmr.msrb.gmra.mxu1 %vm344_vm1, %v1782_v28  ;;  %1176 = vmatmul.msk.f32.vlgmr.msrb.gmra.mxu2 %vm344_vm1, %v1782_v28  ;;  %v825_v36 = vadd.f32 %v824_v41, %v823_v49  ;;  %v832_v52 = vmul.f32 %v831_v45, %v1749_v4  ;;  %v874_v53 = vstv %s1759_s25  ;;  %p1389_p2 = pnand %p1388_p1, %p1541_p4  ;;  %s1391_s25 = scalar_lea.hbm %s2027_s9, 32 }
  0xc4   : > { %1202 = vmatpush.msk.msra.mxu1 %vm348_vm0, %v704_v50  ;;  %v786_v39 = vadd.f32 %v785_v32, %v782_v40  ;;  %v866_v44 = vmul.f32 %v865_v37, %v1723_v42  ;;  %v871_v54 = vmul.f32 %v870_v35, %v1729_v47  ;;  %v917_v55 = vstv %s1763_s26  ;;  %p1393_p6 = scmp.lt.s32.totalorder %s1391_s25, %s1387_s2 }
  0xc5   : > { %v747_v56 = vadd.f32 %v746_v27, %v743_v51  ;;  %v829_v57 = vadd.f32 %v828_v34, %v825_v36  ;;  %v909_v58 = vmul.f32 %v908_v46, %v1723_v42  ;;  %v914_v41 = vmul.f32 %v913_v43, %v1729_v47  ;;  %p1390_p3 = pneg %p1389_p2 }
  0xc6   : > { %v790_v59 = vadd.f32 %v789_v48, %v786_v39  ;;  %v868_v60 = vadd.f32 %v867_v29, %v866_v44  ;;  %v875_v45 = vmul.f32 %v874_v53, %v1749_v4  ;;  %v918_v37 = vmul.f32 %v917_v55, %v1749_v4  ;;  %p1394_p7 = por %p1393_p6, %p1392_p5 }
  0xc7   : > { %1211 = vmatpush.msk.msra.mxu2 %vm348_vm0, %v747_v56  ;;  %v833_v61 = vadd.f32 %v832_v52, %v829_v57  ;;  %v911_v62 = vadd.f32 %v910_v33, %v909_v58  ;;  %v1463_v5 = vmov 0  }
  0xc8   : > { %1220 = vmatpush.msk.msra.mxu3 %vm348_vm0, %v790_v59  ;;  %v872_v0 = vadd.f32 %v871_v54, %v868_v60  ;;  %p1395_p9 = pnand %p1394_p7, %p1390_p3 }
  0xc9   : > { %1229 = vmatpush.msk.msrb.mxu0 %vm348_vm0, %v833_v61  ;;  %v915_v42 = vadd.f32 %v914_v41, %v911_v62 }
  0xca   : > { %v876_v46 = vadd.f32 %v875_v45, %v872_v0  ;;  %1152 = vmatmul.msk.f32.gmra.mxu3 %vm344_vm1, %v341_v63  ;;  %1159 = vmatmul.msk.f32.gmra.mxu0 %vm344_vm1, %v341_v63 }
  0xcb   : > { %v919_v47 = vadd.f32 %v918_v37, %v915_v42  ;;  %1177 = vmatmul.msk.f32.gmra.mxu2 %vm344_vm1, %v341_v63  ;;  %1168 = vmatmul.msk.f32.gmra.mxu1 %vm344_vm1, %v341_v63 }
  0xcc   : > { %1238 = vmatpush.msk.msrb.mxu1 %vm348_vm0, %v876_v46 }
  0xcd   : > { %1247 = vmatpush.msk.msrb.mxu2 %vm348_vm0, %v919_v47 }
  0xd2   : > { %1185 = vmatmul.msk.f32.vlgmr.msrb.gmra.mxu3 %vm344_vm1, %v1782_v28  ;;  %1194 = vmatmul.msk.f32.vlgmr.msra.gmra.mxu0 %vm344_vm1, %v1782_v28 }
  0xd3   : > { %1212 = vmatmul.msk.f32.vlgmr.msra.gmra.mxu2 %vm344_vm1, %v1782_v28  ;;  %1203 = vmatmul.msk.f32.vlgmr.msra.gmra.mxu1 %vm344_vm1, %v1782_v28 }
  0xda   : > { %1186 = vmatmul.msk.f32.gmra.mxu3 %vm344_vm1, %v341_v63  ;;  %1195 = vmatmul.msk.f32.gmra.mxu0 %vm344_vm1, %v341_v63 }
  0xdb   : > { %1213 = vmatmul.msk.f32.gmra.mxu2 %vm344_vm1, %v341_v63  ;;  %1204 = vmatmul.msk.f32.gmra.mxu1 %vm344_vm1, %v341_v63 }
  0xe2   : > { %1221 = vmatmul.msk.f32.vlgmr.msra.gmra.mxu3 %vm344_vm1, %v1782_v28  ;;  %1230 = vmatmul.msk.f32.vlgmr.msrb.gmra.mxu0 %vm344_vm1, %v1782_v28 }
  0xe3   : > { %1248 = vmatmul.msk.f32.vlgmr.msrb.gmra.mxu2 %vm344_vm1, %v1782_v28  ;;  %1239 = vmatmul.msk.f32.vlgmr.msrb.gmra.mxu1 %vm344_vm1, %v1782_v28 }
  0xea   : > { %1222 = vmatmul.msk.f32.gmra.mxu3 %vm344_vm1, %v341_v63  ;;  %1231 = vmatmul.msk.f32.gmra.mxu0 %vm344_vm1, %v341_v63 }
  0xeb   : > { %1249 = vmatmul.msk.f32.gmra.mxu2 %vm344_vm1, %v341_v63  ;;  %1240 = vmatmul.msk.f32.gmra.mxu1 %vm344_vm1, %v341_v63 }
 0x13f   : > { %v504_v1 = vpop.f32.mrf.mxu0 }
 0x140   : > { %1160 = vst [vmem:[%s1877_s14 + $0x10] sm:$0xff] %v504_v1  ;;  %v553_v2 = vpop.f32.mrf.mxu1 }
 0x141   : > { %1169 = vst [vmem:[%s1877_s14 + $0x20] sm:$0xff] %v553_v2 }
 0x145   : > { %v462_v3 = vpop.f32.mrf.mxu3 }
 0x146   : > { %468 = vst [vmem:[%s1877_s14] sm:$0xff] %v462_v3  ;;  %vm513_vm2 = vcmp.gt.f32.partialorder %v504_v1, %v462_v3  ;;  %v596_v4 = vpop.f32.mrf.mxu2 }
 0x147   : > { %v515_v6 = vsel %vm513_vm2, 1, %v1463_v5  ;;  %1178 = vst [vmem:[%s1877_s14 + $0x30] sm:$0xff] %v596_v4  ;;  %v507_v7 = vpop.f32.mrf.mxu0 }
 0x148   : > { %517 = vst [vmem:[%s317_s12] sm:$0xff] %v515_v6  ;;  %v556_v8 = vpop.f32.mrf.mxu1 }
 0x149   : > { %1161 = vst [vmem:[%s1877_s14 + $0x18] sm:$0xff] %v507_v7 }
 0x14a   : > { %1170 = vst [vmem:[%s1877_s14 + $0x28] sm:$0xff] %v556_v8 }
 0x14d   : > { %v465_v9 = vpop.f32.mrf.mxu3 }
 0x14e   : > { %469 = vst [vmem:[%s1877_s14 + $0x8] sm:$0xff] %v465_v9  ;;  %vm514_vm3 = vcmp.gt.f32.partialorder %v507_v7, %v465_v9  ;;  %v599_v10 = vpop.f32.mrf.mxu2 }
 0x14f   : > { %v516_v11 = vsel %vm514_vm3, 1, %v1463_v5  ;;  %1179 = vst [vmem:[%s1877_s14 + $0x38] sm:$0xff] %v599_v10  ;;  %v682_v12 = vpop.f32.mrf.mxu0 }
 0x150   : > { %518 = vst [vmem:[%s317_s12 + $0x8] sm:$0xff] %v516_v11  ;;  %v725_v14 = vpop.f32.mrf.mxu1 }
 0x151   : > { %1196 = vst [vmem:[%s1877_s14 + $0x50] sm:$0xff] %v682_v12 }
 0x152   : > { %1205 = vst [vmem:[%s1877_s14 + $0x60] sm:$0xff] %v725_v14 }
 0x153   : > { %1398 = shalt.err (!%p1395_p9)
}
 0x154   : > { %s1464_s28 = smov 128   ;;  %s1465_s5 = smov 8  }
 0x155   : > { %1268 = dma.vmem_to_hbm [thread:$0]  (%p1541_p4), %s978_s18, 256, %s980_s6, %s959_s19, %s1464_s28, %s1464_s28, %s1465_s5   ;;  %v639_v13 = vpop.f32.mrf.mxu3 }
 0x156   : > { %1187 = vst [vmem:[%s1877_s14 + $0x40] sm:$0xff] %v639_v13  ;;  %v768_v15 = vpop.f32.mrf.mxu2 }
 0x157   : > { %1214 = vst [vmem:[%s1877_s14 + $0x70] sm:$0xff] %v768_v15  ;;  %v685_v16 = vpop.f32.mrf.mxu0 }
 0x158   : > { %1197 = vst [vmem:[%s1877_s14 + $0x58] sm:$0xff] %v685_v16  ;;  %v728_v17 = vpop.f32.mrf.mxu1 }
 0x159   : > { %1206 = vst [vmem:[%s1877_s14 + $0x68] sm:$0xff] %v728_v17 }
 0x15d   : > { %v642_v18 = vpop.f32.mrf.mxu3 }
 0x15e   : > { %1188 = vst [vmem:[%s1877_s14 + $0x48] sm:$0xff] %v642_v18  ;;  %v771_v19 = vpop.f32.mrf.mxu2 }
 0x15f   : > { %1215 = vst [vmem:[%s1877_s14 + $0x78] sm:$0xff] %v771_v19  ;;  %v854_v20 = vpop.f32.mrf.mxu0 }
 0x160   : > { %1232 = vst [vmem:[%s1877_s14 + $0x90] sm:$0xff] %v854_v20  ;;  %v897_v21 = vpop.f32.mrf.mxu1 }
 0x161   : > { %1241 = vst [vmem:[%s1877_s14 + $0xa0] sm:$0xff] %v897_v21 }
 0x165   : > { %v811_v22 = vpop.f32.mrf.mxu3 }
 0x166   : > { %1223 = vst [vmem:[%s1877_s14 + $0x80] sm:$0xff] %v811_v22  ;;  %v940_v23 = vpop.f32.mrf.mxu2 }
 0x167   : > { %1250 = vst [vmem:[%s1877_s14 + $0xb0] sm:$0xff] %v940_v23  ;;  %v857_v24 = vpop.f32.mrf.mxu0 }
 0x168   : > { %1233 = vst [vmem:[%s1877_s14 + $0x98] sm:$0xff] %v857_v24  ;;  %v900_v25 = vpop.f32.mrf.mxu1 }
 0x169   : > { %1242 = vst [vmem:[%s1877_s14 + $0xa8] sm:$0xff] %v900_v25 }
 0x16d   : > { %v814_v26 = vpop.f32.mrf.mxu3 }
 0x16e   : > { %1224 = vst [vmem:[%s1877_s14 + $0x88] sm:$0xff] %v814_v26  ;;  %v943_v27 = vpop.f32.mrf.mxu2 }
 0x16f   : > { %1251 = vst [vmem:[%s1877_s14 + $0xb8] sm:$0xff] %v943_v27 }
 0x170 PF: > { %s2029_s21 = sld [smem:[#allocation16_spill]] }
 0x171   : > { %s2030_s3 = sld [smem:[#allocation11_spill]] }
 0x176   : > { %p1285_p4 = scmp.ge.s32.totalorder %s2029_s21, 2 }
 0x177   : > { %s1006_s24 = sand.u32 1, %s2030_s3  }
 0x178   : > { %p1278_p10 = pnand %p1285_p4, %p1548_p8  ;;  %s1007_s7 = scalar_lea.sflag [#allocation3], %s1006_s24 }
 0x17a   : > { %p1279_p11 = pneg %p1278_p10 }
 0x17c   : > { %1432 = dma.done.wait (%p1279_p11), %s1007_s7, 256  }
 0x17d   : > { %1434 = vsyncadd (%p1279_p11), %s1007_s7, 4294967040  ;;  %s22_s26 = sadd.s32 1, %s2029_s21   ;;  %s2032_s21 = sld [smem:[#allocation12_spill]] }
 0x17e   : > { %p19_p12 = scmp.ge.s32.totalorder %s22_s26, 4   ;;  %s2033_s22 = sld [smem:[#allocation13_spill]] }
 0x17f   : > { %s2034_s23 = sld [smem:[#allocation20_spill]] }
 0x180   : > { %s2035_s24 = sld [smem:[#allocation15_spill]]  ;;  %21 = sbr.rel (!%p19_p12) target bundleno = 14 (0xe), region = 112 }
 0x181   : > { %s2036_s25 = sld [smem:[#allocation17_spill]] }
 0x185   :  { %1013 = vsyncpa [#allocation3], 1 }
 0x186   :  { %1015 = vsyncpa [#allocation3 + $0x1], 1 }
 0x187   :  { %1016 = vsyncpa [#allocation4], 1 }
 0x188   :  { %1018 = vsyncpa [#allocation4 + $0x1], 1 }
 0x189   :  { %1019 = vsyncpa [#allocation6], 1 }

</bundles_post_ra>
